<compile_context>
chip_gen: v5e
topology: v5e:2x2
jax: 0.10.0
libtpu: 0.0.40
codegen_flags: <defaults>
</compile_context>

<pallas_src>
import jax
import jax.numpy as jnp
from jax.experimental import pallas as pl
from jax.experimental.pallas import tpu as pltpu


def _round_up(x: int, m: int) -> int:
    return ((x + m - 1) // m) * m


def _bert_pooler_kernel(x_ref, w_ref, b_ref, o_ref):
    # x_ref: (tm, H), w_ref: (H, H), b_ref: (1, H), o_ref: (tm, H)
    acc = jnp.dot(x_ref[...], w_ref[...], preferred_element_type=jnp.float32)
    acc = acc + b_ref[...].astype(jnp.float32)
    o_ref[...] = jnp.tanh(acc).astype(o_ref.dtype)


def bert_pooler(hidden_states, weight_t, bias, *, tm=256):
    """
    hidden_states: [B, S, H]
    weight_t:      [H, H]   (transpose of nn.Linear.weight, i.e. x @ weight_t == x @ W^T)
    bias:          [H]
    returns:       [B, H]   tanh(hidden_states[:, 0] @ W^T + b)
    """
    B, S, H = hidden_states.shape
    H2, H3 = weight_t.shape
    assert H == H2 == H3, "BertPooler dense layer must be square [H, H]"

    # First-token slice done outside the kernel (trivial XLA slice).
    x = hidden_states[:, 0, :]                      # [B, H]
    dtype = hidden_states.dtype
    dsize = jnp.dtype(dtype).itemsize

    # Row tile: multiple of 8 (sublane), capped by the (padded) batch.
    M = B
    tm = min(tm, _round_up(M, 8))
    M_pad = _round_up(M, tm)
    if M_pad != M:
        x = jnp.pad(x, ((0, M_pad - M), (0, 0)))

    b2d = bias.reshape(1, H)
    grid = (M_pad // tm,)

    # VMEM budget: double-buffered x/out tiles + resident weight + bias.
    vmem_need = 2 * 2 * tm * H * dsize + 2 * H * H * dsize + 2 * H * dsize
    vmem_limit = int(min(max(vmem_need + (4 << 20), 32 << 20), 48 << 20))

    cost = pl.CostEstimate(
        flops=2 * M_pad * H * H,
        transcendentals=M_pad * H,
        bytes_accessed=(M_pad * H + H * H + H + M_pad * H) * dsize,
    )

    out = pl.pallas_call(
        _bert_pooler_kernel,
        out_shape=jax.ShapeDtypeStruct((M_pad, H), dtype),
        grid_spec=pltpu.PrefetchScalarGridSpec(
            num_scalar_prefetch=0,
            grid=grid,
            in_specs=[
                # Activations stream in row tiles.
                pl.BlockSpec((tm, H), lambda i: (i, 0)),
                # Weight + bias: constant index_map -> fetched once, VMEM-resident.
                pl.BlockSpec((H, H), lambda i: (0, 0)),
                pl.BlockSpec((1, H), lambda i: (0, 0)),
            ],
            out_specs=pl.BlockSpec((tm, H), lambda i: (i, 0)),
        ),
        compiler_params=pltpu.CompilerParams(
            dimension_semantics=("parallel",),
            vmem_limit_bytes=vmem_limit,
        ),
        cost_estimate=cost,
    )(x, weight_t, b2d)

    return out[:M]


if __name__ == "__main__":
    # Small config consistent with the module: batch=2, seq=8, hidden=32.
    batch, seq, hidden = 2, 8, 32

    key = jax.random.PRNGKey(0)
    k_x, k_w, k_b = jax.random.split(key, 3)

    hidden_states = jax.random.normal(k_x, (batch, seq, hidden), dtype=jnp.float32)
    # Deterministic stand-ins for nn.Linear.weight / bias.
    weight = jax.random.normal(k_w, (hidden, hidden), dtype=jnp.float32) * 0.02
    bias = jax.random.normal(k_b, (hidden,), dtype=jnp.float32) * 0.02
    weight_t = weight.T  # [H, H], so x @ weight_t == x @ W^T

    out = bert_pooler(hidden_states, weight_t, bias)
    out = jax.block_until_ready(out)

    # Reference: tanh(hidden_states[:, 0] @ W^T + b)
    ref = jnp.tanh(hidden_states[:, 0] @ weight.T + bias)
    assert out.shape == (batch, hidden)
    assert jnp.allclose(out, ref, atol=1e-5, rtol=1e-5)

    print("KERNEL_OK")
</pallas_src>

<mosaic_0001>
module attributes {stable_mosaic.version = 11 : i64} {
  func.func @_bert_pooler_kernel(%arg0: i32, %arg1: memref<8x32xf32, #tpu.memory_space<vmem>>, %arg2: memref<32x32xf32, #tpu.memory_space<vmem>>, %arg3: memref<1x32xf32, #tpu.memory_space<vmem>>, %arg4: memref<8x32xf32, #tpu.memory_space<vmem>>) attributes {dimension_semantics = [#tpu.dimension_semantics<parallel>], iteration_bounds = array<i64: 1>, scalar_prefetch = 0 : i64, scratch_operands = 0 : i64, tpu.core_type = #tpu.core_type<tc>, window_params = [{transform_indices = @transform_0, window_bounds = array<i64: 8, 32>}, {pipeline_mode = #tpu.pipeline_mode<synchronous>, transform_indices = @transform_1, window_bounds = array<i64: 32, 32>}, {pipeline_mode = #tpu.pipeline_mode<synchronous>, transform_indices = @transform_2, window_bounds = array<i64: 1, 32>}, {transform_indices = @transform_3, window_bounds = array<i64: 8, 32>}]} {
    %c0 = arith.constant 0 : index
    %c0_0 = arith.constant 0 : index
    %0 = vector.load %arg1[%c0, %c0_0] : memref<8x32xf32, #tpu.memory_space<vmem>>, vector<8x32xf32>
    %c0_1 = arith.constant 0 : index
    %c0_2 = arith.constant 0 : index
    %1 = vector.load %arg2[%c0_1, %c0_2] : memref<32x32xf32, #tpu.memory_space<vmem>>, vector<32x32xf32>
    %cst = arith.constant dense<0.000000e+00> : vector<8x32xf32>
    %2 = tpu.matmul %0, %1, %cst {dimension_numbers = #tpu.dot_dimension_numbers<[1], [0], [0], [1], [0, 0, 1, 1], [], []>} : vector<8x32xf32>, vector<32x32xf32>, vector<8x32xf32> -> vector<8x32xf32>
    %c0_3 = arith.constant 0 : index
    %c0_4 = arith.constant 0 : index
    %3 = vector.load %arg3[%c0_3, %c0_4] : memref<1x32xf32, #tpu.memory_space<vmem>>, vector<1x32xf32>
    %4 = vector.broadcast %3 : vector<1x32xf32> to vector<8x32xf32>
    %5 = arith.addf %2, %4 : vector<8x32xf32>
    %6 = math.tanh %5 : vector<8x32xf32>
    %c0_5 = arith.constant 0 : index
    %c0_6 = arith.constant 0 : index
    %7 = vector.load %arg4[%c0_5, %c0_6] : memref<8x32xf32, #tpu.memory_space<vmem>>, vector<8x32xf32>
    tpu.vector_store %arg4[%c0_5, %c0_6], %6 {strides = array<i32>} : memref<8x32xf32, #tpu.memory_space<vmem>>, vector<8x32xf32>,
    return
  }
  func.func @transform_0(%arg0: i32) -> (i32, i32) {
    %c0_i32 = arith.constant 0 : i32
    %c0_i32_0 = arith.constant 0 : i32
    return %arg0, %c0_i32 : i32, i32
  }
  func.func @transform_1(%arg0: i32) -> (i32, i32) {
    %c0_i32 = arith.constant 0 : i32
    %c0_i32_0 = arith.constant 0 : i32
    %c0_i32_1 = arith.constant 0 : i32
    return %c0_i32, %c0_i32_0 : i32, i32
  }
  func.func @transform_2(%arg0: i32) -> (i32, i32) {
    %c0_i32 = arith.constant 0 : i32
    %c0_i32_0 = arith.constant 0 : i32
    %c0_i32_1 = arith.constant 0 : i32
    return %c0_i32, %c0_i32_0 : i32, i32
  }
  func.func @transform_3(%arg0: i32) -> (i32, i32) {
    %c0_i32 = arith.constant 0 : i32
    %c0_i32_0 = arith.constant 0 : i32
    return %arg0, %c0_i32 : i32, i32
  }
}

</mosaic_0001>

<bundles_post_ra>
// kernel: tpu_custom_call.1
= control target key start
LH: loop header
LB: loop body
LE: loop exit
PB: predicated region body
PF: predicated region fallthrough
CT: control target
= control target key end

     0   :  { %8 = vsyncpa [#allocation3], 0  ;;  %s222_s0 = inlined_call_operand.hbm [shape: f32[8,32], index: 0, kind: input, shape index: {}]   ;;  %s223_s1 = inlined_call_operand.hbm [shape: f32[32,32], index: 1, kind: input, shape index: {}]   ;;  %s224_s2 = inlined_call_operand.vmem [shape: f32[1,32], index: 2, kind: input, shape index: {}]   ;;  %s225_s3 = inlined_call_operand.hbm [shape: f32[8,32], index: 3, kind: output, shape index: {}]  }
   0x1   :  { %9 = vsyncpa [#allocation6], 0 }
   0x2   :  { %10 = vsyncpa [#allocation4], 0  ;;  %s16_s14 = sshll.u32 %s222_s0, 4  ;;  %s185_s15 = smov [#allocation2]   ;;  %s17_s14 = int_to_ptr.hbm [resolvable:$true] %s16_s14 }
   0x3   :  { %s18_s16 = sshll.u32 %s185_s15, 4  ;;  %s26_s19 = sshll.u32 %s223_s1, 4  ;;  %s19_s16 = int_to_ptr.vmem [resolvable:$true] %s18_s16  ;;  %s27_s19 = int_to_ptr.hbm [resolvable:$true] %s26_s19 }
   0x4   :  { %21 = dma.hbm_to_vmem [thread:$0]  %s17_s14, 128, %s19_s16, [#allocation3]  }
   0x5   :  { %s186_s20 = smov [#allocation5]   ;;  %s187_s22 = smov 128  }
   0x6   :  { %s28_s21 = sshll.u32 %s186_s20, 4  ;;  %s188_s23 = smov 8   ;;  %s29_s21 = int_to_ptr.vmem [resolvable:$true] %s28_s21 }
   0x7   :  { %34 = dma.hbm_to_vmem [thread:$0]  %s27_s19, 512, %s29_s21, [#allocation6], %s187_s22, %s187_s22, %s188_s23  }
   0x8   :  { %179 = dma.done.wait [#allocation3], 128  }
   0x9   :  { %180 = vsyncadd [#allocation3], 4294967168 }
   0xa   :  { %181 = dma.done.wait [#allocation6], 512  }
   0xb   :  { %182 = vsyncadd [#allocation6], 4294966784  ;;  %v49_v0 = vld [vmem:[#allocation5 + $0x18] sm:$0xff]  ;;  %v48_v1 = vld [vmem:[#allocation5 + $0x10] sm:$0xff]  ;;  %vm54_vm0 = vcmask 261120   ;;  %s189_s24 = smov [#allocation7]  }
   0xc   :  { %70 = vmatpush.msra.mxu0 %v49_v0  ;;  %v47_v2 = vld [vmem:[#allocation5 + $0x8] sm:$0xff]  ;;  %v46_v3 = vld [vmem:[#allocation5] sm:$0xff]  ;;  %v45_v4 = vld [vmem:[#allocation2] sm:$0xff]  ;;  %s85_s25 = sshll.u32 %s189_s24, 4  ;;  %s87_s28 = sshll.u32 %s225_s3, 4  ;;  %s86_s25 = int_to_ptr.vmem [resolvable:$true] %s85_s25  ;;  %s88_s28 = int_to_ptr.hbm [resolvable:$true] %s87_s28 }
   0xd   :  { %v104_v5 = vld [vmem:[%s224_s2] ss:$0 sm:$0xff] }
   0xe   :  { %71 = vmatpush.msra.mxu0 %v48_v1 }
  0x10   :  { %72 = vmatpush.msra.mxu0 %v47_v2 }
  0x12   :  { %73 = vmatpush.msra.mxu0 %v46_v3 }
  0x13   :  { %98 = vmatmul.msk.f32.vlgmr.msra.gmra.mxu0 %vm54_vm0, %v45_v4 }
  0x90   :  { %v75_v6 = vpop.f32.mrf.mxu0 }
  0x91   :  { %v76_v7 = vadd.f32 %v104_v5, %v75_v6 }
  0x93   :  { %105 = vtanh.f32 %v76_v7 }
  0x99   :  { %v106_v8 = vpop.eup %105 }
  0x9a   :  { %79 = vst.msk [vmem:[#allocation7] sm:$0xff] %vm54_vm0, %v106_v8 }
  0x9b   :  { %90 = dma.vmem_to_hbm [thread:$0]  %s86_s25, 128, %s88_s28, [#allocation4]  }
  0x9c   :  { %183 = dma.done.wait [#allocation4], 128  }
  0x9d   :  { %184 = vsyncadd [#allocation4], 4294967168 }
  0x9e   :  { %95 = vsyncpa [#allocation3], 1 }
  0x9f   :  { %96 = vsyncpa [#allocation6], 1 }
  0xa0   :  { %97 = vsyncpa [#allocation4], 1 }

</bundles_post_ra>
